<compile_context>
chip_gen: v6e
topology: v6e:2x2x1
jax: 0.10.0
libtpu: 0.0.40
codegen_flags: <defaults>
</compile_context>

<pallas_src>
import functools

import jax
import jax.numpy as jnp
from jax.experimental import pallas as pl
from jax.experimental.pallas import tpu as pltpu


def _round_up(x, m):
    return ((x + m - 1) // m) * m


def _decoder_kernel(x_ref, w12_ref, b12_ref, w3_ref, b3_ref, o_ref):
    """Fused (folded Linear) -> Tanh -> Linear on one packed batch tile."""
    h = jnp.tanh(
        jnp.dot(x_ref[...], w12_ref[...], preferred_element_type=jnp.float32)
        + b12_ref[...]
    )
    o_ref[...] = (
        jnp.dot(h.astype(w3_ref.dtype), w3_ref[...],
                preferred_element_type=jnp.float32)
        + b3_ref[...]
    ).astype(o_ref.dtype)


@functools.partial(jax.jit, static_argnames=("block_b", "use_bf16"))
def ae_decoder_forward(x, w1, b1, w2, b2, w3, b3, *, block_b=16384, use_bf16=False):
    """AE_Decoder forward via a single fused Pallas kernel, tiled over batch."""
    B, d_in = x.shape
    hidden = w1.shape[1]
    d_out = w3.shape[1]

    # ---- Fold Linear1 + Linear2 (no activation between them; exact in math) ----
    w12 = jnp.dot(w1, w2, preferred_element_type=jnp.float32)      # (d_in, hidden)
    b12 = jnp.dot(b1, w2, preferred_element_type=jnp.float32) + b2  # (1, hidden)

    # ---- Lane-dense packing: `pack` batch rows side by side per vreg row ----
    if d_in < 128 and 128 % d_in == 0:
        pack = 128 // d_in
    else:
        pack = 1  # layout already lane-dense enough; no packing

    B_pad = _round_up(B, pack)
    if B_pad != B:
        x = jnp.concatenate([x, jnp.zeros((B_pad - B, d_in), x.dtype)], axis=0)
    Bp = B_pad // pack

    eye = jnp.eye(pack, dtype=jnp.float32)
    w12_p = jnp.kron(eye, w12)                 # (pack*d_in, pack*hidden) block-diag
    w3_p = jnp.kron(eye, w3.astype(jnp.float32))  # (pack*hidden, pack*d_out)
    b12_p = jnp.tile(b12, (1, pack))           # (1, pack*hidden)
    b3_p = jnp.tile(b3, (1, pack))             # (1, pack*d_out)

    kin, kmid, kout = pack * d_in, pack * hidden, pack * d_out

    # Free (contiguous row-major) reshape: 4 consecutive rows become one wide row.
    x_p = x.reshape(Bp, kin)

    # Optional bf16 streaming of x + weights (reduces HBM bytes; f32 accumulation,
    # f32 bias/tanh).  Off by default: it breaks a 1e-4 allclose tolerance.
    mm_dtype = jnp.bfloat16 if use_bf16 else jnp.float32
    x_p = x_p.astype(mm_dtype)
    w12_p = w12_p.astype(mm_dtype)
    w3_p = w3_p.astype(mm_dtype)

    # ---- Batch tiling over packed rows ----
    # VMEM cap from block_b (given in unpacked rows), multiple of 8 packed rows.
    cap = max(8, ((block_b // pack) // 8) * 8)
    tb = min(Bp, cap)
    if Bp >= 1024:
        # Large batch: ensure >= 4 grid steps so v7x's two TensorCores each get
        # >= 2 pipelined steps (no-op cost on single-TC v5e/v6e at this tile size).
        tb = min(tb, _round_up(pl.cdiv(Bp, 4), 8))
    if tb < Bp:
        tb = max(8, (tb // 8) * 8)  # (8,128) sublane constraint when tiled
    grid = (pl.cdiv(Bp, tb),)
    # Note: when Bp % tb != 0 the last block reads padded rows; every output row
    # depends only on its own input row and OOB writes are masked, so this is safe.

    itemsize = jnp.dtype(mm_dtype).itemsize
    cost = pl.CostEstimate(
        flops=2 * Bp * (kin * kmid + kmid * kout),
        transcendentals=Bp * kmid,
        bytes_accessed=(Bp * kin * itemsize + Bp * kout * 4
                        + (kin * kmid + kmid * kout) * itemsize
                        + (kmid + kout) * 4),
    )

    resident = lambda shape: pl.BlockSpec(shape, lambda i: (0, 0))  # noqa: E731

    out_p = pl.pallas_call(
        _decoder_kernel,
        out_shape=jax.ShapeDtypeStruct((Bp, kout), jnp.float32),
        grid=grid,
        in_specs=[
            pl.BlockSpec((tb, kin), lambda i: (i, 0)),
            resident((kin, kmid)), resident((1, kmid)),
            resident((kmid, kout)), resident((1, kout)),
        ],
        out_specs=pl.BlockSpec((tb, kout), lambda i: (i, 0)),
        compiler_params=pltpu.CompilerParams(
            dimension_semantics=("parallel",),
            vmem_limit_bytes=32 * 1024 * 1024,
        ),
        cost_estimate=cost,
    )(x_p, w12_p, b12_p, w3_p, b3_p)

    out = out_p.reshape(B_pad, d_out)
    return out[:B] if B_pad != B else out


def init_params(key, dim):
    """Synthetic init mimicking nn.Linear default U[-1/sqrt(fan_in), 1/sqrt(fan_in)].

    Weights stored transposed relative to PyTorch: (in_features, out_features).
    """
    dim0, dim1 = dim
    h = dim0 // 2
    ks = jax.random.split(key, 6)

    def lin(kw, kb, fan_in, fan_out):
        bound = 1.0 / jnp.sqrt(jnp.float32(fan_in))
        w = jax.random.uniform(kw, (fan_in, fan_out), jnp.float32, -bound, bound)
        b = jax.random.uniform(kb, (1, fan_out), jnp.float32, -bound, bound)
        return w, b

    w1, b1 = lin(ks[0], ks[1], dim1, h)
    w2, b2 = lin(ks[2], ks[3], h, h)
    w3, b3 = lin(ks[4], ks[5], h, dim0)
    return w1, b1, w2, b2, w3, b3


def reference_forward(x, w1, b1, w2, b2, w3, b3):
    """Unfolded 3-layer reference matching the PyTorch module exactly."""
    h = x @ w1 + b1
    h = jnp.tanh(h @ w2 + b2)
    return h @ w3 + b3


if __name__ == "__main__":
    key = jax.random.PRNGKey(0)
    k_x, k_x2, k_p = jax.random.split(key, 3)

    # dim = (dim0, dim1) as in AE_Decoder(dim); latent dim1=32, output dim0=64.
    dim = (64, 32)
    params = init_params(k_p, dim)

    # Small batch: single grid step, exercises the 4-row lane packing (Bp=2).
    batch = 8
    x = jax.random.normal(k_x, (batch, dim[1]), jnp.float32)
    out = jax.block_until_ready(ae_decoder_forward(x, *params))
    ref = reference_forward(x, *params)
    assert out.shape == (batch, dim[0])
    assert jnp.allclose(out, ref, atol=1e-4, rtol=1e-4), "mismatch vs reference (B=8)"

    # Larger batch: exercises pack-padding (1002 -> 1004), multi-step grid with a
    # ragged last block (block_b=512 unpacked rows -> 128 packed rows per tile).
    batch2 = 1002
    x2 = jax.random.normal(k_x2, (batch2, dim[1]), jnp.float32)
    out2 = jax.block_until_ready(ae_decoder_forward(x2, *params, block_b=512))
    ref2 = reference_forward(x2, *params)
    assert out2.shape == (batch2, dim[0])
    assert jnp.allclose(out2, ref2, atol=1e-4, rtol=1e-4), "mismatch vs reference (B=1002)"

    print("KERNEL_OK")
</pallas_src>

<mosaic_0001>
module attributes {stable_mosaic.version = 11 : i64} {
  func.func @_decoder_kernel(%arg0: i32, %arg1: memref<2x128xf32, #tpu.memory_space<vmem>>, %arg2: memref<128x128xf32, #tpu.memory_space<vmem>>, %arg3: memref<1x128xf32, #tpu.memory_space<vmem>>, %arg4: memref<128x256xf32, #tpu.memory_space<vmem>>, %arg5: memref<1x256xf32, #tpu.memory_space<vmem>>, %arg6: memref<2x256xf32, #tpu.memory_space<vmem>>) attributes {dimension_semantics = [#tpu.dimension_semantics<parallel>], iteration_bounds = array<i64: 1>, scalar_prefetch = 0 : i64, scratch_operands = 0 : i64, tpu.core_type = #tpu.core_type<tc>, window_params = [{transform_indices = @transform_0, window_bounds = array<i64: 2, 128>}, {pipeline_mode = #tpu.pipeline_mode<synchronous>, transform_indices = @transform_1, window_bounds = array<i64: 128, 128>}, {pipeline_mode = #tpu.pipeline_mode<synchronous>, transform_indices = @transform_2, window_bounds = array<i64: 1, 128>}, {pipeline_mode = #tpu.pipeline_mode<synchronous>, transform_indices = @transform_3, window_bounds = array<i64: 128, 256>}, {pipeline_mode = #tpu.pipeline_mode<synchronous>, transform_indices = @transform_4, window_bounds = array<i64: 1, 256>}, {transform_indices = @transform_5, window_bounds = array<i64: 2, 256>}]} {
    %c0 = arith.constant 0 : index
    %c0_0 = arith.constant 0 : index
    %0 = vector.load %arg1[%c0, %c0_0] : memref<2x128xf32, #tpu.memory_space<vmem>>, vector<2x128xf32>
    %c0_1 = arith.constant 0 : index
    %c0_2 = arith.constant 0 : index
    %1 = vector.load %arg2[%c0_1, %c0_2] : memref<128x128xf32, #tpu.memory_space<vmem>>, vector<128x128xf32>
    %cst = arith.constant dense<0.000000e+00> : vector<2x128xf32>
    %2 = tpu.matmul %0, %1, %cst {dimension_numbers = #tpu.dot_dimension_numbers<[1], [0], [0], [1], [0, 0, 1, 1], [], []>} : vector<2x128xf32>, vector<128x128xf32>, vector<2x128xf32> -> vector<2x128xf32>
    %c0_3 = arith.constant 0 : index
    %c0_4 = arith.constant 0 : index
    %3 = vector.load %arg3[%c0_3, %c0_4] : memref<1x128xf32, #tpu.memory_space<vmem>>, vector<1x128xf32>
    %4 = vector.broadcast %3 : vector<1x128xf32> to vector<2x128xf32>
    %5 = arith.addf %2, %4 : vector<2x128xf32>
    %6 = math.tanh %5 : vector<2x128xf32>
    %c0_5 = arith.constant 0 : index
    %c0_6 = arith.constant 0 : index
    %7 = vector.load %arg4[%c0_5, %c0_6] : memref<128x256xf32, #tpu.memory_space<vmem>>, vector<128x256xf32>
    %cst_7 = arith.constant dense<0.000000e+00> : vector<2x256xf32>
    %8 = tpu.matmul %6, %7, %cst_7 {dimension_numbers = #tpu.dot_dimension_numbers<[1], [0], [0], [1], [0, 0, 1, 1], [], []>} : vector<2x128xf32>, vector<128x256xf32>, vector<2x256xf32> -> vector<2x256xf32>
    %c0_8 = arith.constant 0 : index
    %c0_9 = arith.constant 0 : index
    %9 = vector.load %arg5[%c0_8, %c0_9] : memref<1x256xf32, #tpu.memory_space<vmem>>, vector<1x256xf32>
    %10 = vector.broadcast %9 : vector<1x256xf32> to vector<2x256xf32>
    %11 = arith.addf %8, %10 : vector<2x256xf32>
    %c0_10 = arith.constant 0 : index
    %c0_11 = arith.constant 0 : index
    %12 = vector.load %arg6[%c0_10, %c0_11] : memref<2x256xf32, #tpu.memory_space<vmem>>, vector<2x256xf32>
    tpu.vector_store %arg6[%c0_10, %c0_11], %11 {strides = array<i32>} : memref<2x256xf32, #tpu.memory_space<vmem>>, vector<2x256xf32>,
    return
  }
  func.func @transform_0(%arg0: i32) -> (i32, i32) {
    %c0_i32 = arith.constant 0 : i32
    %c0_i32_0 = arith.constant 0 : i32
    return %arg0, %c0_i32 : i32, i32
  }
  func.func @transform_1(%arg0: i32) -> (i32, i32) {
    %c0_i32 = arith.constant 0 : i32
    %c0_i32_0 = arith.constant 0 : i32
    %c0_i32_1 = arith.constant 0 : i32
    return %c0_i32, %c0_i32_0 : i32, i32
  }
  func.func @transform_2(%arg0: i32) -> (i32, i32) {
    %c0_i32 = arith.constant 0 : i32
    %c0_i32_0 = arith.constant 0 : i32
    %c0_i32_1 = arith.constant 0 : i32
    return %c0_i32, %c0_i32_0 : i32, i32
  }
  func.func @transform_3(%arg0: i32) -> (i32, i32) {
    %c0_i32 = arith.constant 0 : i32
    %c0_i32_0 = arith.constant 0 : i32
    %c0_i32_1 = arith.constant 0 : i32
    return %c0_i32, %c0_i32_0 : i32, i32
  }
  func.func @transform_4(%arg0: i32) -> (i32, i32) {
    %c0_i32 = arith.constant 0 : i32
    %c0_i32_0 = arith.constant 0 : i32
    %c0_i32_1 = arith.constant 0 : i32
    return %c0_i32, %c0_i32_0 : i32, i32
  }
  func.func @transform_5(%arg0: i32) -> (i32, i32) {
    %c0_i32 = arith.constant 0 : i32
    %c0_i32_0 = arith.constant 0 : i32
    return %arg0, %c0_i32 : i32, i32
  }
}

</mosaic_0001>

<bundles_post_ra>
// kernel: ae_decoder_forward.1
= control target key start
LH: loop header
LB: loop body
LE: loop exit
PB: predicated region body
PF: predicated region fallthrough
CT: control target
= control target key end

     0   :  { %v304_v0 = vmov 0.0   ;;  %vm305_vm0 = vmmov 0   ;;  %v149_v55 = vlaneseq  ;;  %s510_s1 = inlined_call_operand.vmem [shape: f32[128,128], index: 1, kind: input, shape index: {}]   ;;  %s511_s3 = inlined_call_operand.vmem [shape: f32[128,256], index: 3, kind: input, shape index: {}]   ;;  %s512_s0 = inlined_call_operand.vmem [shape: f32[2,128], index: 0, kind: input, shape index: {}]   ;;  %s513_s2 = inlined_call_operand.vmem [shape: f32[1,128], index: 2, kind: input, shape index: {}]   ;;  %s514_s4 = inlined_call_operand.vmem [shape: f32[1,256], index: 4, kind: input, shape index: {}]   ;;  %s515_s5 = inlined_call_operand.vmem [shape: f32[2,256], index: 5, kind: output, shape index: {}]  }
   0x1   :  { %265 = vmatprep.subr.mxu0 %v304_v0  ;;  %v36_v1 = vld [vmem:[%s510_s1 + $0x78] sm:$0xff]  ;;  %v35_v2 = vld [vmem:[%s510_s1 + $0x70] sm:$0xff]  ;;  %297 = vmatprep.mubr.msk.f32.mxu0 %vm305_vm0, %v304_v0  ;;  %v34_v3 = vld [vmem:[%s510_s1 + $0x68] sm:$0xff] }
   0x2   :  { %266 = vmatpush3.msra.mxu0 %v36_v1  ;;  %223 = vmatprep.mubr.f32.mxu1 %v304_v0  ;;  %v33_v4 = vld [vmem:[%s510_s1 + $0x60] sm:$0xff]  ;;  %v32_v5 = vld [vmem:[%s510_s1 + $0x58] sm:$0xff]  ;;  %v145_v7 = vld [vmem:[%s511_s3 + $0xf0] sm:$0xff]  ;;  %v150_v56 = vshrl.u32 %v149_v55, 7 }
   0x3   :  { %267 = vmatprep.subr.mxu0 %v304_v0  ;;  %v146_v6 = vld [vmem:[%s511_s3 + $0xf8] sm:$0xff]  ;;  %v144_v8 = vld [vmem:[%s511_s3 + $0xe8] sm:$0xff]  ;;  %v143_v9 = vld [vmem:[%s511_s3 + $0xe0] sm:$0xff] }
   0x4   :  { %268 = vmatpush3.msra.mxu0 %v35_v2  ;;  %159 = vmatprep.subr.mxu1 %v146_v6  ;;  %v142_v10 = vld [vmem:[%s511_s3 + $0xd8] sm:$0xff]  ;;  %v31_v11 = vld [vmem:[%s510_s1 + $0x50] sm:$0xff]  ;;  %v140_v13 = vld [vmem:[%s511_s3 + $0xc8] sm:$0xff]  ;;  %v151_v57 = vsub.s32 0, %v150_v56  ;;  %v155_v58 = vsub.s32 1, %v150_v56 }
   0x5   :  { %269 = vmatprep.subr.mxu0 %v304_v0  ;;  %160 = vmatpush1.msra.mxu1 %v145_v7  ;;  %v141_v12 = vld [vmem:[%s511_s3 + $0xd0] sm:$0xff]  ;;  %v30_v14 = vld [vmem:[%s510_s1 + $0x48] sm:$0xff]  ;;  %v139_v15 = vld [vmem:[%s511_s3 + $0xc0] sm:$0xff] }
   0x6   :  { %270 = vmatpush3.msra.mxu0 %v34_v3  ;;  %161 = vmatprep.subr.mxu1 %v144_v8  ;;  %v138_v16 = vld [vmem:[%s511_s3 + $0xb8] sm:$0xff]  ;;  %v29_v17 = vld [vmem:[%s510_s1 + $0x40] sm:$0xff]  ;;  %v137_v18 = vld [vmem:[%s511_s3 + $0xb0] sm:$0xff] }
   0x7   :  { %271 = vmatprep.subr.mxu0 %v304_v0  ;;  %162 = vmatpush1.msra.mxu1 %v143_v9  ;;  %v136_v19 = vld [vmem:[%s511_s3 + $0xa8] sm:$0xff]  ;;  %v28_v20 = vld [vmem:[%s510_s1 + $0x38] sm:$0xff]  ;;  %v135_v21 = vld [vmem:[%s511_s3 + $0xa0] sm:$0xff] }
   0x8   :  { %272 = vmatpush3.msra.mxu0 %v33_v4  ;;  %163 = vmatprep.subr.mxu1 %v142_v10  ;;  %v134_v22 = vld [vmem:[%s511_s3 + $0x98] sm:$0xff]  ;;  %v27_v23 = vld [vmem:[%s510_s1 + $0x30] sm:$0xff]  ;;  %v132_v25 = vld [vmem:[%s511_s3 + $0x88] sm:$0xff] }
   0x9   :  { %273 = vmatprep.subr.mxu0 %v304_v0  ;;  %164 = vmatpush1.msra.mxu1 %v141_v12  ;;  %v133_v24 = vld [vmem:[%s511_s3 + $0x90] sm:$0xff]  ;;  %v26_v26 = vld [vmem:[%s510_s1 + $0x28] sm:$0xff]  ;;  %v25_v27 = vld [vmem:[%s510_s1 + $0x20] sm:$0xff] }
   0xa   :  { %274 = vmatpush3.msra.mxu0 %v32_v5  ;;  %165 = vmatprep.subr.mxu1 %v140_v13  ;;  %v24_v28 = vld [vmem:[%s510_s1 + $0x18] sm:$0xff]  ;;  %v23_v29 = vld [vmem:[%s510_s1 + $0x10] sm:$0xff]  ;;  %v22_v30 = vld [vmem:[%s510_s1 + $0x8] sm:$0xff] }
   0xb   :  { %275 = vmatprep.subr.mxu0 %v304_v0  ;;  %166 = vmatpush1.msra.mxu1 %v139_v15  ;;  %v21_v31 = vld [vmem:[%s510_s1] sm:$0xff]  ;;  %v130_v34 = vld [vmem:[%s511_s3 + $0x78] sm:$0xff]  ;;  %v129_v35 = vld [vmem:[%s511_s3 + $0x70] sm:$0xff] }
   0xc   :  { %276 = vmatpush3.msra.mxu0 %v31_v11  ;;  %167 = vmatprep.subr.mxu1 %v138_v16  ;;  %v20_v32 = vld [vmem:[%s512_s0] sm:$0x3]  ;;  %v128_v36 = vld [vmem:[%s511_s3 + $0x68] sm:$0xff]  ;;  %v126_v38 = vld [vmem:[%s511_s3 + $0x58] sm:$0xff] }
   0xd   :  { %277 = vmatprep.subr.mxu0 %v304_v0  ;;  %168 = vmatpush1.msra.mxu1 %v137_v18  ;;  %v131_v33 = vld [vmem:[%s511_s3 + $0x80] sm:$0xff]  ;;  %v125_v39 = vld [vmem:[%s511_s3 + $0x50] sm:$0xff]  ;;  %v124_v40 = vld [vmem:[%s511_s3 + $0x48] sm:$0xff] }
   0xe   :  { %278 = vmatpush3.msra.mxu0 %v30_v14  ;;  %169 = vmatprep.subr.mxu1 %v136_v19  ;;  %v127_v37 = vld [vmem:[%s511_s3 + $0x60] sm:$0xff]  ;;  %v122_v42 = vld [vmem:[%s511_s3 + $0x38] sm:$0xff]  ;;  %v121_v43 = vld [vmem:[%s511_s3 + $0x30] sm:$0xff] }
   0xf   :  { %279 = vmatprep.subr.mxu0 %v304_v0  ;;  %170 = vmatpush1.msra.mxu1 %v135_v21  ;;  %v123_v41 = vld [vmem:[%s511_s3 + $0x40] sm:$0xff]  ;;  %v120_v44 = vld [vmem:[%s511_s3 + $0x28] sm:$0xff]  ;;  %v118_v46 = vld [vmem:[%s511_s3 + $0x18] sm:$0xff] }
  0x10   :  { %280 = vmatpush3.msra.mxu0 %v29_v17  ;;  %171 = vmatprep.subr.mxu1 %v134_v22  ;;  %v119_v45 = vld [vmem:[%s511_s3 + $0x20] sm:$0xff]  ;;  %v117_v47 = vld [vmem:[%s511_s3 + $0x10] sm:$0xff]  ;;  %v116_v48 = vld [vmem:[%s511_s3 + $0x8] sm:$0xff] }
  0x11   :  { %281 = vmatprep.subr.mxu0 %v304_v0  ;;  %172 = vmatpush1.msra.mxu1 %v133_v24  ;;  %v115_v49 = vld [vmem:[%s511_s3] sm:$0xff] }
  0x12   :  { %282 = vmatpush3.msra.mxu0 %v28_v20  ;;  %173 = vmatprep.subr.mxu1 %v132_v25  ;;  %v246_v50 = vld [vmem:[%s513_s2] ss:$0 sm:$0xff] }
  0x13   :  { %283 = vmatprep.subr.mxu0 %v304_v0  ;;  %174 = vmatpush1.msra.mxu1 %v131_v33  ;;  %v147_v59 = vld [vmem:[%s514_s4] sm:$0x3] }
  0x14   :  { %284 = vmatpush3.msra.mxu0 %v27_v23  ;;  %175 = vmatprep.subr.mxu1 %v130_v34  ;;  %v152_v60 = vrot.slane %v147_v59, %v151_v57  ;;  %v156_v61 = vrot.slane %v147_v59, %v155_v58 }
  0x15   :  { %285 = vmatprep.subr.mxu0 %v304_v0  ;;  %176 = vmatpush1.msra.mxu1 %v129_v35 }
  0x16   :  { %286 = vmatpush3.msra.mxu0 %v26_v26  ;;  %177 = vmatprep.subr.mxu1 %v128_v36 }
  0x17   :  { %287 = vmatprep.subr.mxu0 %v304_v0  ;;  %178 = vmatpush1.msra.mxu1 %v127_v37 }
  0x18   :  { %288 = vmatpush3.msra.mxu0 %v25_v27  ;;  %179 = vmatprep.subr.mxu1 %v126_v38 }
  0x19   :  { %289 = vmatprep.subr.mxu0 %v304_v0  ;;  %180 = vmatpush1.msra.mxu1 %v125_v39 }
  0x1a   :  { %290 = vmatpush3.msra.mxu0 %v24_v28  ;;  %181 = vmatprep.subr.mxu1 %v124_v40 }
  0x1b   :  { %291 = vmatprep.subr.mxu0 %v304_v0  ;;  %182 = vmatpush1.msra.mxu1 %v123_v41 }
  0x1c   :  { %292 = vmatpush3.msra.mxu0 %v23_v29  ;;  %183 = vmatprep.subr.mxu1 %v122_v42 }
  0x1d   :  { %293 = vmatprep.subr.mxu0 %v304_v0  ;;  %184 = vmatpush1.msra.mxu1 %v121_v43 }
  0x1e   :  { %294 = vmatpush3.msra.mxu0 %v22_v30  ;;  %185 = vmatprep.subr.mxu1 %v120_v44 }
  0x1f   :  { %295 = vmatprep.subr.mxu0 %v304_v0  ;;  %186 = vmatpush1.msra.mxu1 %v119_v45 }
  0x20   :  { %296 = vmatpush3.msra.mxu0 %v21_v31  ;;  %187 = vmatprep.subr.mxu1 %v118_v46 }
  0x21   :  { %298 = vmatmul.mubr.f32.vlgmr.msra.gmra.mxu0 %v20_v32  ;;  %188 = vmatpush1.msra.mxu1 %v117_v47 }
  0x22   :  { %189 = vmatprep.subr.mxu1 %v116_v48 }
  0x23   :  { %190 = vmatpush1.msra.mxu1 %v115_v49 }
  0xe1   :  { %v110_v51 = vpop.f32.mrf.mxu0 }
  0xe2   :  { %v111_v52 = vadd.f32 %v246_v50, %v110_v51 }
  0xe3   :  { %v299_v53 = vpop.f32.mrf.mxu0 }
  0xe4   :  { %302 = vtanh.f32 %v111_v52 }
  0xf1   :  { %v303_v54 = vpop.eup %302 }
  0xf2   :  { %224 = vmatmul.mubr.f32.vlgmr.msra.gmra.mxu1 %v303_v54 }
 0x1b2   :  { %v225_v62 = vpop.f32.mrf.mxu1 }
 0x1b3   :  { %v226_v0 = vadd.f32 %v225_v62, %v152_v60 }
 0x1b4   :  { %v227_v63 = vpop.f32.mrf.mxu1 }
 0x1b5   :  { %v228_v1 = vadd.f32 %v227_v63, %v156_v61 }
 0x1b7   :  { %v232_v2 = vcombine.low %v226_v0, %v228_v1 }
 0x1b9   :  { %247 = vst.sshfl [vmem:[%s515_s5] sm:$0x33 pattern:$0x76325410] %v232_v2 }

</bundles_post_ra>
